<compile_context>
chip_gen: v7x
topology: tpu7x:2x2x1
jax: 0.10.0
libtpu: 0.0.40
codegen_flags: <defaults>
</compile_context>

<pallas_src>
import functools

import jax
import jax.numpy as jnp
from jax.experimental import pallas as pl
from jax.experimental.pallas import tpu as pltpu

_LANES = 128
_SUBLANES = 8
_EPS = 1e-6
_MAX_TILE_ROWS = 4096          # (4096, 128) f32 = 2 MiB per input per buffer
_NUM_CORES = 2                 # v7x has 2 TCs; extra outer iter is free elsewhere
_VMEM_LIMIT = 48 * 1024 * 1024


def _round_up(x, m):
    return ((x + m - 1) // m) * m


def _silog_kernel(pred_ref, target_ref, out_ref, *, n_rows, tr, steps, aligned):
    c = pl.program_id(0)   # core axis ("parallel")
    i = pl.program_id(1)   # row-tile axis ("arbitrary", accumulates)

    @pl.when(i == 0)
    def _():
        out_ref[...] = jnp.zeros_like(out_ref)

    t_raw = target_ref[...].astype(jnp.float32)
    p = jnp.maximum(pred_ref[...].astype(jnp.float32), _EPS)
    t = jnp.maximum(t_raw, _EPS)
    base_valid = t_raw > _EPS

    def fold(x):
        # (tr, 128) -> (8, 128): groups whole sublane tiles, so the axis-0 sum
        # is pure elementwise VPU adds; the expensive cross-lane reduction is
        # deferred to the tiny JAX-side combine.
        return x.reshape(tr // _SUBLANES, _SUBLANES, _LANES).sum(axis=0)

    def accumulate(valid):
        # Single EUP transcendental per element (fused logs).  `where` is a
        # select (not a multiply), so NaN/garbage in OOB rows cannot poison
        # the sums.
        diff_log = jnp.where(valid, jnp.log(p / t), 0.0)
        out_ref[0, 0, :, :] += fold(valid.astype(jnp.float32))
        out_ref[0, 1, :, :] += fold(diff_log)
        out_ref[0, 2, :, :] += fold(diff_log * diff_log)

    if aligned:
        # Tiles cover the rows exactly: no row mask anywhere.
        accumulate(base_valid)
    else:
        # int32 is fine for < 2^31 rows (~2.7e11 elements).
        start_row = (c * steps + i) * tr
        needs_row_mask = start_row + tr > n_rows

        @pl.when(needs_row_mask)
        def _():
            row_ids = (jax.lax.broadcasted_iota(jnp.int32, (tr, _LANES), 0)
                       + start_row)
            accumulate(jnp.logical_and(base_valid, row_ids < n_rows))

        @pl.when(jnp.logical_not(needs_row_mask))
        def _():
            accumulate(base_valid)


def _partial_sums_jnp(pred, target):
    """Plain-JAX partial sums (count, sum, sum of squares) for tiny tails."""
    t_raw = target.astype(jnp.float32)
    p = jnp.maximum(pred.astype(jnp.float32), _EPS)
    t = jnp.maximum(t_raw, _EPS)
    valid = t_raw > _EPS
    diff_log = jnp.where(valid, jnp.log(p) - jnp.log(t), 0.0)
    return (jnp.sum(valid.astype(jnp.float32)),
            jnp.sum(diff_log),
            jnp.sum(diff_log * diff_log))


def silog_loss(pred, target, lambd=0.5):
    """Scale-invariant log loss, matching the PyTorch reference forward.
    `lambd` is stored by the PyTorch module but unused in its forward pass."""
    del lambd  # unused in the reference forward
    assert pred.shape == target.shape

    n = pred.size
    p_flat = pred.reshape(-1)
    t_flat = target.reshape(-1)

    n_main = (n // _LANES) * _LANES
    if n_main < n:
        # < 128-element tail: reduce with plain jnp (tiny) instead of copying
        # the whole tensor with a pad/concatenate.
        tail_cnt, tail_sum, tail_sq = _partial_sums_jnp(
            p_flat[n_main:], t_flat[n_main:])
        # TODO(synk): the prefix slice below may still copy n_main elements in
        # XLA; a fully copy-free ragged path would need manual HBM DMA.
        p_flat = p_flat[:n_main]
        t_flat = t_flat[:n_main]
    else:
        tail_cnt = jnp.float32(0.0)
        tail_sum = jnp.float32(0.0)
        tail_sq = jnp.float32(0.0)

    if n_main == 0:
        count = tail_cnt + _EPS
        log_mean = tail_sum / count
        squared_term = tail_sq / count
        return jnp.sqrt(squared_term + log_mean * log_mean)

    n_rows = n_main // _LANES
    p2 = p_flat.reshape(n_rows, _LANES)
    t2 = t_flat.reshape(n_rows, _LANES)

    num_cores = _NUM_CORES if n_rows > _SUBLANES else 1
    tr = min(_MAX_TILE_ROWS,
             _round_up(pl.cdiv(n_rows, num_cores), _SUBLANES))
    steps = pl.cdiv(n_rows, num_cores * tr)
    aligned = (num_cores * steps * tr == n_rows)
    last_block = pl.cdiv(n_rows, tr) - 1

    def row_map(c, i):
        # Clamp so a (rare) fully-OOB block just re-reads the last real block;
        # the in-kernel row mask zeroes its contribution.
        return (jnp.minimum(c * steps + i, last_block), 0)

    kernel = functools.partial(_silog_kernel, n_rows=n_rows, tr=tr,
                               steps=steps, aligned=aligned)

    bytes_accessed = (p2.size * p2.dtype.itemsize
                      + t2.size * t2.dtype.itemsize)

    partials = pl.pallas_call(
        kernel,
        out_shape=jax.ShapeDtypeStruct(
            (num_cores, 3, _SUBLANES, _LANES), jnp.float32),
        grid_spec=pltpu.PrefetchScalarGridSpec(
            num_scalar_prefetch=0,
            grid=(num_cores, steps),
            in_specs=[
                pl.BlockSpec((tr, _LANES), row_map),
                pl.BlockSpec((tr, _LANES), row_map),
            ],
            out_specs=pl.BlockSpec((1, 3, _SUBLANES, _LANES),
                                   lambda c, i: (c, 0, 0, 0)),
        ),
        compiler_params=pltpu.CompilerParams(
            dimension_semantics=("parallel", "arbitrary"),
            vmem_limit_bytes=_VMEM_LIMIT),
        cost_estimate=pl.CostEstimate(
            flops=10 * n_main,
            transcendentals=2 * n_main,
            bytes_accessed=int(bytes_accessed)),
    )(p2, t2)

    # Tiny cross-core / cross-lane / cross-sublane combine in plain JAX.
    sums = jnp.sum(partials, axis=(0, 2, 3))          # (3,)
    count = sums[0] + tail_cnt + _EPS
    log_mean = (sums[1] + tail_sum) / count
    squared_term = (sums[2] + tail_sq) / count
    return jnp.sqrt(squared_term + log_mean * log_mean)


def _silog_ref(pred, target):
    valid_mask = (target > _EPS).astype(jnp.float32)
    p = jnp.maximum(pred, _EPS)
    t = jnp.maximum(target, _EPS)
    diff_log = (jnp.log(p) - jnp.log(t)) * valid_mask
    count = jnp.sum(valid_mask) + _EPS
    log_mean = jnp.sum(diff_log) / count
    squared_term = jnp.sum(diff_log ** 2) / count
    return jnp.sqrt(squared_term + log_mean ** 2)


if __name__ == "__main__":
    key = jax.random.PRNGKey(0)
    k1, k2, k3 = jax.random.split(key, 3)

    B, C, H, W = 2, 4, 16, 16  # NCHW as in the PyTorch reference
    pred = jax.random.uniform(k1, (B, C, H, W), jnp.float32,
                              minval=0.1, maxval=10.0)
    target = jax.random.uniform(k2, (B, C, H, W), jnp.float32,
                                minval=0.1, maxval=10.0)
    # Make some target pixels invalid (<= 1e-6) to exercise the mask path.
    invalid = jax.random.bernoulli(k3, 0.2, (B, C, H, W))
    target = jnp.where(invalid, 0.0, target)

    loss = jax.block_until_ready(silog_loss(pred, target))
    ref = jax.block_until_ready(_silog_ref(pred, target))
    assert jnp.allclose(loss, ref, rtol=1e-5, atol=1e-6), (loss, ref)

    # Ragged shape (numel % 128 != 0): exercises the gated row mask, the
    # index-map clamp and the plain-jnp tail fold.
    k4, k5 = jax.random.split(k3)
    pred_r = jax.random.uniform(k4, (3, 5, 7, 11), jnp.float32,
                                minval=0.1, maxval=10.0)
    target_r = jax.random.uniform(k5, (3, 5, 7, 11), jnp.float32,
                                  minval=0.1, maxval=10.0)
    loss_r = jax.block_until_ready(silog_loss(pred_r, target_r))
    ref_r = jax.block_until_ready(_silog_ref(pred_r, target_r))
    assert jnp.allclose(loss_r, ref_r, rtol=1e-5, atol=1e-6), (loss_r, ref_r)

    print("KERNEL_OK")
</pallas_src>

<mosaic_0001>
module attributes {stable_mosaic.version = 11 : i64} {
  func.func @_silog_kernel(%arg0: i32, %arg1: i32, %arg2: memref<8x128xf32, #tpu.memory_space<vmem>>, %arg3: memref<8x128xf32, #tpu.memory_space<vmem>>, %arg4: memref<1x3x8x128xf32, #tpu.memory_space<vmem>>) attributes {dimension_semantics = [#tpu.dimension_semantics<parallel>, #tpu.dimension_semantics<arbitrary>], iteration_bounds = array<i64: 2, 1>, scalar_prefetch = 0 : i64, scratch_operands = 0 : i64, tpu.core_type = #tpu.core_type<tc>, window_params = [{transform_indices = @transform_0, window_bounds = array<i64: 8, 128>}, {transform_indices = @transform_1, window_bounds = array<i64: 8, 128>}, {transform_indices = @transform_2, window_bounds = array<i64: 1, 3, 8, 128>}]} {
    %c0_i32 = arith.constant 0 : i32
    %0 = arith.cmpi eq, %arg1, %c0_i32 : i32
    %1 = arith.extui %0 : i1 to i32
    %c0_i32_0 = arith.constant 0 : i32
    %2 = arith.cmpi ne, %1, %c0_i32_0 : i32
    scf.if %2 {
      %cst_32 = arith.constant 0.000000e+00 : f32
      %42 = vector.broadcast %cst_32 : f32 to vector<1x3x8x128xf32>
      %c0_33 = arith.constant 0 : index
      %c0_34 = arith.constant 0 : index
      %c0_35 = arith.constant 0 : index
      %c0_36 = arith.constant 0 : index
      %43 = vector.load %arg4[%c0_33, %c0_34, %c0_35, %c0_36] : memref<1x3x8x128xf32, #tpu.memory_space<vmem>>, vector<1x3x8x128xf32>
      tpu.vector_store %arg4[%c0_33, %c0_34, %c0_35, %c0_36], %42 {strides = array<i32>} : memref<1x3x8x128xf32, #tpu.memory_space<vmem>>, vector<1x3x8x128xf32>,
    } else {
    }
    %c0 = arith.constant 0 : index
    %c0_1 = arith.constant 0 : index
    %3 = vector.load %arg3[%c0, %c0_1] : memref<8x128xf32, #tpu.memory_space<vmem>>, vector<8x128xf32>
    %c0_2 = arith.constant 0 : index
    %c0_3 = arith.constant 0 : index
    %4 = vector.load %arg2[%c0_2, %c0_3] : memref<8x128xf32, #tpu.memory_space<vmem>>, vector<8x128xf32>
    %cst = arith.constant 9.99999997E-7 : f32
    %5 = vector.broadcast %cst : f32 to vector<8x128xf32>
    %6 = arith.maximumf %4, %5 : vector<8x128xf32>
    %cst_4 = arith.constant 9.99999997E-7 : f32
    %7 = vector.broadcast %cst_4 : f32 to vector<8x128xf32>
    %8 = arith.maximumf %3, %7 : vector<8x128xf32>
    %cst_5 = arith.constant 9.99999997E-7 : f32
    %9 = vector.broadcast %cst_5 : f32 to vector<8x128xf32>
    %10 = arith.cmpf ogt, %3, %9 : vector<8x128xf32>
    %11 = arith.divf %6, %8 : vector<8x128xf32>
    %12 = math.log %11 : vector<8x128xf32>
    %cst_6 = arith.constant 0.000000e+00 : f32
    %13 = vector.broadcast %cst_6 : f32 to vector<8x128xf32>
    %14 = arith.select %10, %12, %13 : vector<8x128xi1>, vector<8x128xf32>
    %c0_7 = arith.constant 0 : index
    %c0_8 = arith.constant 0 : index
    %c0_9 = arith.constant 0 : index
    %c0_10 = arith.constant 0 : index
    %15 = vector.load %arg4[%c0_7, %c0_8, %c0_9, %c0_10] : memref<1x3x8x128xf32, #tpu.memory_space<vmem>>, vector<1x1x8x128xf32>
    %16 = vector.shape_cast %15 : vector<1x1x8x128xf32> to vector<8x128xf32>
    %17 = arith.extui %10 : vector<8x128xi1> to vector<8x128xi32>
    %18 = arith.sitofp %17 : vector<8x128xi32> to vector<8x128xf32>
    %19 = vector.shape_cast %18 : vector<8x128xf32> to vector<1x8x128xf32>
    %cst_11 = arith.constant dense<0.000000e+00> : vector<8x128xf32>
    %20 = vector.multi_reduction <add>, %19, %cst_11 [0] : vector<1x8x128xf32> to vector<8x128xf32>
    %21 = arith.addf %16, %20 : vector<8x128xf32>
    %c0_12 = arith.constant 0 : index
    %c0_13 = arith.constant 0 : index
    %c0_14 = arith.constant 0 : index
    %c0_15 = arith.constant 0 : index
    %22 = vector.load %arg4[%c0_12, %c0_13, %c0_14, %c0_15] : memref<1x3x8x128xf32, #tpu.memory_space<vmem>>, vector<1x1x8x128xf32>
    %23 = vector.shape_cast %22 : vector<1x1x8x128xf32> to vector<8x128xf32>
    %24 = vector.shape_cast %21 : vector<8x128xf32> to vector<1x1x8x128xf32>
    tpu.vector_store %arg4[%c0_12, %c0_13, %c0_14, %c0_15], %24 {strides = array<i32>} : memref<1x3x8x128xf32, #tpu.memory_space<vmem>>, vector<1x1x8x128xf32>,
    %c0_16 = arith.constant 0 : index
    %c1 = arith.constant 1 : index
    %c0_17 = arith.constant 0 : index
    %c0_18 = arith.constant 0 : index
    %25 = vector.load %arg4[%c0_16, %c1, %c0_17, %c0_18] : memref<1x3x8x128xf32, #tpu.memory_space<vmem>>, vector<1x1x8x128xf32>
    %26 = vector.shape_cast %25 : vector<1x1x8x128xf32> to vector<8x128xf32>
    %27 = vector.shape_cast %14 : vector<8x128xf32> to vector<1x8x128xf32>
    %cst_19 = arith.constant dense<0.000000e+00> : vector<8x128xf32>
    %28 = vector.multi_reduction <add>, %27, %cst_19 [0] : vector<1x8x128xf32> to vector<8x128xf32>
    %29 = arith.addf %26, %28 : vector<8x128xf32>
    %c0_20 = arith.constant 0 : index
    %c1_21 = arith.constant 1 : index
    %c0_22 = arith.constant 0 : index
    %c0_23 = arith.constant 0 : index
    %30 = vector.load %arg4[%c0_20, %c1_21, %c0_22, %c0_23] : memref<1x3x8x128xf32, #tpu.memory_space<vmem>>, vector<1x1x8x128xf32>
    %31 = vector.shape_cast %30 : vector<1x1x8x128xf32> to vector<8x128xf32>
    %32 = vector.shape_cast %29 : vector<8x128xf32> to vector<1x1x8x128xf32>
    tpu.vector_store %arg4[%c0_20, %c1_21, %c0_22, %c0_23], %32 {strides = array<i32>} : memref<1x3x8x128xf32, #tpu.memory_space<vmem>>, vector<1x1x8x128xf32>,
    %c0_24 = arith.constant 0 : index
    %c2 = arith.constant 2 : index
    %c0_25 = arith.constant 0 : index
    %c0_26 = arith.constant 0 : index
    %33 = vector.load %arg4[%c0_24, %c2, %c0_25, %c0_26] : memref<1x3x8x128xf32, #tpu.memory_space<vmem>>, vector<1x1x8x128xf32>
    %34 = vector.shape_cast %33 : vector<1x1x8x128xf32> to vector<8x128xf32>
    %35 = arith.mulf %14, %14 : vector<8x128xf32>
    %36 = vector.shape_cast %35 : vector<8x128xf32> to vector<1x8x128xf32>
    %cst_27 = arith.constant dense<0.000000e+00> : vector<8x128xf32>
    %37 = vector.multi_reduction <add>, %36, %cst_27 [0] : vector<1x8x128xf32> to vector<8x128xf32>
    %38 = arith.addf %34, %37 : vector<8x128xf32>
    %c0_28 = arith.constant 0 : index
    %c2_29 = arith.constant 2 : index
    %c0_30 = arith.constant 0 : index
    %c0_31 = arith.constant 0 : index
    %39 = vector.load %arg4[%c0_28, %c2_29, %c0_30, %c0_31] : memref<1x3x8x128xf32, #tpu.memory_space<vmem>>, vector<1x1x8x128xf32>
    %40 = vector.shape_cast %39 : vector<1x1x8x128xf32> to vector<8x128xf32>
    %41 = vector.shape_cast %38 : vector<8x128xf32> to vector<1x1x8x128xf32>
    tpu.vector_store %arg4[%c0_28, %c2_29, %c0_30, %c0_31], %41 {strides = array<i32>} : memref<1x3x8x128xf32, #tpu.memory_space<vmem>>, vector<1x1x8x128xf32>,
    return
  }
  func.func @transform_0(%arg0: i32, %arg1: i32) -> (i32, i32) {
    %c1_i32 = arith.constant 1 : i32
    %0 = arith.muli %arg0, %c1_i32 : i32
    %1 = arith.addi %0, %arg1 : i32
    %c1_i32_0 = arith.constant 1 : i32
    %2 = arith.minsi %1, %c1_i32_0 : i32
    %c0_i32 = arith.constant 0 : i32
    %c0_i32_1 = arith.constant 0 : i32
    return %2, %c0_i32 : i32, i32
  }
  func.func @transform_1(%arg0: i32, %arg1: i32) -> (i32, i32) {
    %c1_i32 = arith.constant 1 : i32
    %0 = arith.muli %arg0, %c1_i32 : i32
    %1 = arith.addi %0, %arg1 : i32
    %c1_i32_0 = arith.constant 1 : i32
    %2 = arith.minsi %1, %c1_i32_0 : i32
    %c0_i32 = arith.constant 0 : i32
    %c0_i32_1 = arith.constant 0 : i32
    return %2, %c0_i32 : i32, i32
  }
  func.func @transform_2(%arg0: i32, %arg1: i32) -> (i32, i32, i32, i32) {
    %c0_i32 = arith.constant 0 : i32
    %c0_i32_0 = arith.constant 0 : i32
    %c0_i32_1 = arith.constant 0 : i32
    %c0_i32_2 = arith.constant 0 : i32
    return %arg0, %c0_i32, %c0_i32_0, %c0_i32_1 : i32, i32, i32, i32
  }
}

</mosaic_0001>

<bundles_post_ra>
// kernel: tpu_custom_call.1
= control target key start
LH: loop header
LB: loop body
LE: loop exit
PB: predicated region body
PF: predicated region fallthrough
CT: control target
= control target key end

     0   :  { %7 = vsyncpa [#allocation3], 0  ;;  %s950_s0 = inlined_call_operand.hbm [shape: f32[16,128], index: 0, kind: input, shape index: {}]   ;;  %s951_s1 = inlined_call_operand.hbm [shape: f32[16,128], index: 1, kind: input, shape index: {}]   ;;  %s952_s2 = inlined_call_operand.hbm [shape: f32[2,3,8,128], index: 2, kind: output, shape index: {}]  }
   0x1   :  { %9 = vsyncpa [#allocation3 + $0x1], 0 }
   0x2   :  { %10 = vsyncpa [#allocation6], 0 }
   0x3   :  { %12 = vsyncpa [#allocation6 + $0x1], 0 }
   0x4   :  { %13 = vsyncpa [#allocation4], 0 }
   0x5   :  { %15 = vsyncpa [#allocation4 + $0x1], 0  ;;  %s696_s9 = smov 0   ;;  %s698_s10 = smov 0  }
   0x6   :  { %s700_s11 = smov 0   ;;  %s702_s12 = smov 0  }
   0x7   :  { %s704_s13 = smov 0   ;;  %s706_s14 = smov 0  }
   0x8   :  { %s708_s15 = smov 0   ;;  %s710_s16 = smov 0  }
   0x9   :  { %s712_s17 = smov 0  }
   0xa LB: > { %s384_s18 = sadd.s32 4294967295, %s673_s17   ;;  %s385_s19 = sadd.s32 4294967294, %s673_s17   ;;  %s673_s17 = sphi %s712_s17, %s21_s17   ;;  %s669_s16 = sphi %s710_s16, %s977_s16   ;;  %s665_s15 = sphi %s708_s15, %s976_s15   ;;  %s661_s14 = sphi %s706_s14, %s975_s14   ;;  %s657_s13 = sphi %s704_s13, %s974_s13   ;;  %s653_s12 = sphi %s702_s12, %s973_s12   ;;  %s649_s11 = sphi %s700_s11, %s972_s11   ;;  %s645_s10 = sphi %s698_s10, %s971_s10   ;;  %s641_s9 = sphi %s696_s9, %s970_s9  }
   0xb   : > { %s33_s20 = sadd.s32 1, %s669_s16  ;;  %p38_p0 = scmp.lt.s32.totalorder %s669_s16, 1 }
   0xc   : > { %p35_p1 = scmp.ge.s32.totalorder %s33_s20, 2  ;;  %s46_s21 = sadd.s32 1, %s661_s14 }
   0xd   : > { %s745_s22 = scalar_select %p38_p0, %s669_s16, 1 }
   0xe   : > { %s979_s20 = smov (%p35_p1, %s33_s20), 0  ;;  %p53_p2 = scmp.ne.s32.totalorder %s661_s14, %s657_s13 }
   0xf   : > { %p54_p3 = scmp.eq.s32.totalorder %s673_s17, 0  ;;  %p41_p4 = scmp.lt.s32.totalorder %s979_s20, 1 }
  0x10   : > { %p59_p5 = scmp.ne.s32.totalorder %s657_s13, %s653_s12  ;;  %p60_p7 = scmp.eq.s32.totalorder %s384_s18, 0 }
  0x11   : > { %p754_p6 = por %p54_p3, %p53_p2  ;;  %s101_s26 = ssub.s32 %s669_s16, %s979_s20 }
  0x12   : > { %s42_s24 = scalar_select %p41_p4, %s979_s20, 1 }
  0x13   : > { %p759_p8 = por %p60_p7, %p59_p5  ;;  %p102_p9 = scmp.eq.s32.totalorder %s101_s26, 0 }
  0x14   : > { %s43_s27 = ssub.s32 %s745_s22, %s42_s24  ;;  %s104_s28 = sadd.s32 1, %s649_s11 }
  0x15   : > { %s957_s25 = scalar_select %p759_p8, 1, 0 }
  0x16   : > { %p44_p10 = scmp.eq.s32.totalorder %s43_s27, 0  ;;  %p114_p11 = scmp.ne.s32.totalorder %s649_s11, %s645_s10 }
  0x17   : > { %s768_s29 = scalar_select %p102_p9, %s649_s11, %s104_s28  }
  0x18   : > { %s771_s30 = scalar_select %p44_p10, %s661_s14, %s46_s21  }
  0x19   : > { %p115_p12 = scmp.eq.s32.totalorder %s384_s18, 1  ;;  %p120_p13 = scmp.ne.s32.totalorder %s645_s10, %s641_s9 }
  0x1a   : > { %p121_p0 = scmp.eq.s32.totalorder %s385_s19, 1  ;;  %p422_p4 = scmp.lt.s32.totalorder %s673_s17, 2 }
  0x1b   : > { %p777_p1 = por %p115_p12, %p114_p11  ;;  %s788_s5 = sand.u32 1, %s661_s14  }
  0x1c   : > { %p782_p3 = por %p121_p0, %p120_p13  ;;  %s389_s6 = sshll.u32 %s745_s22, 7 }
  0x1d   : > { %s958_s3 = scalar_select %p777_p1, 1, 0 }
  0x1e   : > { %s959_s4 = scalar_select %p782_p3, 1, 0 }
  0x1f   : > { %s953_s7 = sshll.u32 %s788_s5, 3  ;;  %s797_s18 = scalar_lea.hbm %s950_s0, %s389_s6 }
  0x20   : > { %s145_s19 = scalar_lea.vmem [#allocation2], %s953_s7  ;;  %p803_p5 = pnand %p422_p4, %p754_p6 }
  0x21   : > { %s155_s21 = sshll.u32 %s145_s19, 4  ;;  %s142_s26 = scalar_lea.sflag [#allocation3], %s788_s5  ;;  %s807_s21 = int_to_ptr.vmem [resolvable:$true] %s155_s21 }
  0x22   : > { %s503_s27 = scalar_lea.hbm %s797_s18, 128  ;;  %p505_p11 = pneg %p803_p5 }
  0x23   : > { %p504_p10 = scmp.ne.s32.totalorder %s797_s18, %s503_s27  ;;  %s508_s8 = scalar_lea.hbm %s950_s0, 256 }
  0x24   : > { %p509_p6 = scmp.lt.u32.totalorder %s797_s18, %s950_s0  ;;  %p510_p0 = scmp.lt.u32.totalorder %s508_s8, %s503_s27 }
  0x25   : > { %p506_p12 = pnand %p505_p11, %p504_p10  ;;  %p512_p2 = scmp.lt.u32.totalorder %s503_s27, %s797_s18 }
  0x26   : > { %p511_p4 = por %p510_p0, %p509_p6 }
  0x27   : > { %p507_p13 = pneg %p506_p12 }
  0x28   : > { %p513_p7 = por %p512_p2, %p511_p4 }
  0x2a   : > { %p514_p9 = pnand %p513_p7, %p507_p13 }
  0x2c   : > { %517 = shalt.err (!%p514_p9)
}
  0x2d   : > { %s518_s7 = scalar_lea.vmem %s807_s21, 128  ;;  %s675_s23 = smov [#allocation2]  }
  0x2e   : > { %p519_p10 = scmp.ne.s32.totalorder %s807_s21, %s518_s7  ;;  %s523_s28 = sshll.u32 %s675_s23, 4  ;;  %s524_s28 = int_to_ptr.vmem [resolvable:$false] %s523_s28 }
  0x2f   : > { %s525_s12 = scalar_lea.vmem %s524_s28, 256  ;;  %p526_p1 = scmp.lt.s32.totalorder %s807_s21, %s524_s28 }
  0x30   : > { %p521_p12 = pnand %p519_p10, %p505_p11  ;;  %p527_p6 = scmp.lt.s32.totalorder %s525_s12, %s518_s7 }
  0x32   : > { %p522_p3 = pneg %p521_p12  ;;  %p528_p0 = por %p527_p6, %p526_p1 }
  0x34   : > { %p529_p2 = pnand %p528_p0, %p522_p3 }
  0x36   : > { %532 = shalt.err (!%p529_p2)
}
  0x37   : > { %414 = dma.hbm_to_vmem [thread:$0]  (!%p803_p5), %s797_s18, 128, %s807_s21, %s142_s26  }
  0x38   : > { %p961_p7 = scmp.lt.s32.totalorder %s673_s17, 3  ;;  %p962_p9 = scmp.ge.s32.totalorder %s673_s17, 1 }
  0x39   : > { %s850_s19 = scalar_lea.hbm %s951_s1, %s389_s6  ;;  %s964_s23 = sshll.u32 %s788_s5, 3 }
  0x3a   : > { %p841_p13 = pnand %p962_p9, %p961_p7  ;;  %s166_s28 = scalar_lea.vmem [#allocation5], %s964_s23 }
  0x3b   : > { %s176_s12 = sshll.u32 %s166_s28, 4  ;;  %s163_s18 = scalar_lea.sflag [#allocation6], %s788_s5  ;;  %s177_s12 = int_to_ptr.vmem [resolvable:$true] %s176_s12 }
  0x3c   : > { %s963_s27 = scalar_select %p841_p13, 1, 0 }
  0x3d   : > { %s533_s21 = scalar_lea.hbm %s850_s19, 128  ;;  %s538_s6 = scalar_lea.hbm %s951_s1, 256 }
  0x3e   : > { %p534_p1 = scmp.ne.s32.totalorder %s850_s19, %s533_s21  ;;  %p539_p10 = scmp.lt.u32.totalorder %s850_s19, %s951_s1 }
  0x3f   : > { %p540_p12 = scmp.lt.u32.totalorder %s538_s6, %s533_s21  ;;  %p542_p0 = scmp.lt.u32.totalorder %s533_s21, %s850_s19 }
  0x40   : > { %p536_p3 = pnand %p534_p1, %p505_p11 }
  0x41   : > { %p541_p6 = por %p540_p12, %p539_p10 }
  0x42   : > { %p537_p4 = pneg %p536_p3 }
  0x43   : > { %p543_p2 = por %p542_p0, %p541_p6 }
  0x45   : > { %p544_p7 = pnand %p543_p2, %p537_p4 }
  0x47   : > { %547 = shalt.err (!%p544_p7)
}
  0x48   : > { %s548_s5 = scalar_lea.vmem %s177_s12, 128  ;;  %s676_s23 = smov [#allocation5]  }
  0x49   : > { %p549_p9 = scmp.ne.s32.totalorder %s177_s12, %s548_s5  ;;  %s553_s28 = sshll.u32 %s676_s23, 4  ;;  %s554_s28 = int_to_ptr.vmem [resolvable:$false] %s553_s28 }
  0x4a   : > { %s555_s22 = scalar_lea.vmem %s554_s28, 256  ;;  %p556_p8 = scmp.lt.s32.totalorder %s177_s12, %s554_s28 }
  0x4b   : > { %p551_p1 = pnand %p549_p9, %p505_p11  ;;  %p557_p13 = scmp.lt.s32.totalorder %s555_s22, %s548_s5 }
  0x4d   : > { %p552_p3 = pneg %p551_p1  ;;  %p558_p10 = por %p557_p13, %p556_p8 }
  0x4f   : > { %p559_p12 = pnand %p558_p10, %p552_p3 }
  0x51   : > { %562 = shalt.err (!%p559_p12)
}
  0x52   : > { %417 = dma.hbm_to_vmem [thread:$0]  (!%p803_p5), %s850_s19, 128, %s177_s12, %s163_s18  }
  0x53   : > { %p965_p4 = scmp.ne.s32.totalorder %s963_s27, 0 }
  0x54   : > { %s187_s21 = sand.u32 (!%p965_p4), 1, %s657_s13   ;;  %p966_p11 = scmp.ne.s32.totalorder (!%p965_p4), %s957_s25, 0 }
  0x55   : > { %185 = sbr.rel (%p965_p4) target bundleno = 142 (0x8e), region = 28  ;;  %s393_s26 = sshll.u32 (!%p965_p4), %s187_s21, 3 }
  0x56   : > { %s188_s6 = scalar_lea.sflag (!%p965_p4), [#allocation3], %s187_s21  ;;  %s191_s7 = scalar_lea.vmem (!%p965_p4), [#allocation2], %s393_s26 }
  0x5c   : > { %628 = dma.done.wait (%p966_p11), %s188_s6, 128  }
  0x5d   : > { %630 = vsyncadd (%p966_p11), %s188_s6, 4294967168  ;;  %s197_s8 = scalar_lea.sflag [#allocation6], %s187_s21  ;;  %s200_s5 = scalar_lea.vmem [#allocation5], %s393_s26 }
  0x5e   : > { %632 = dma.done.wait (%p966_p11), %s197_s8, 128  }
  0x5f   : > { %634 = vsyncadd (%p966_p11), %s197_s8, 4294967168  ;;  %s223_s24 = sand.u32 1, %s645_s10   ;;  %v239_v0 = vld [vmem:[%s200_s5] sm:$0xff]  ;;  %v677_v2 = vmov 0.0   ;;  %v240_v4 = vld [vmem:[%s191_s7] sm:$0xff]  ;;  %s404_s25 = smul.u32 384, %s665_s15 }
  0x60   : > { %s403_s27 = smul.u32 24, %s223_s24  ;;  %v242_v1 = vmax.f32 %v239_v0, 1e-06  ;;  %vm243_vm0 = vcmp.gt.f32.partialorder %v239_v0, 1e-06  ;;  %s894_s22 = scalar_lea.sflag [#allocation4], %s223_s24 }
  0x61   : > { %v395_v3 = vsel %vm243_vm0, 1.0, %v677_v2  ;;  %v241_v5 = vmax.f32 %v240_v4, 1e-06  ;;  %s890_s28 = scalar_lea.hbm %s952_s2, %s404_s25  ;;  %p967_p5 = scmp.ne.s32.totalorder %s958_s3, 0 }
  0x62   : > { %499 = vrcp.f32 %v242_v1  ;;  %s225_s19 = scalar_lea.vmem [#allocation7], %s403_s27  ;;  %s678_s15 = smov [#allocation7]  }
  0x63   : > { %254 = vst [vmem:[%s225_s19] sm:$0xff] %v395_v3  ;;  %s280_s12 = sshll.u32 %s225_s19, 4  ;;  %s567_s26 = sshll.u32 %s678_s15, 4  ;;  %s892_s12 = int_to_ptr.vmem [resolvable:$true] %s280_s12  ;;  %s568_s26 = int_to_ptr.vmem [resolvable:$false] %s567_s26 }
  0x64   : > { %s563_s21 = scalar_lea.vmem %s892_s12, 384  ;;  %s569_s6 = scalar_lea.vmem %s568_s26, 768 }
  0x65   : > { %p564_p8 = scmp.ne.s32.totalorder %s892_s12, %s563_s21  ;;  %p570_p0 = scmp.lt.s32.totalorder %s892_s12, %s568_s26 }
  0x66   : > { %p571_p2 = scmp.lt.s32.totalorder %s569_s6, %s563_s21 }
  0x67   : > { %p565_p13 = pnand %p564_p8, %p967_p5 }
  0x68   : > { %p572_p7 = por %p571_p2, %p570_p0 }
  0x69   : > { %p566_p6 = pneg %p565_p13 }
  0x6b   : > { %p573_p9 = pnand %p572_p7, %p566_p6 }
  0x6c   : > { %v500_v6 = vpop.eup %499 }
  0x6d   : > { %v245_v7 = vmul.f32 %v500_v6, %v241_v5 }
  0x6f   : > { %501 = vlog2.f32 %v245_v7 }
  0x79   : > { %v502_v8 = vpop.eup %501 }
  0x7a   : > { %v247_v9 = vmul.f32 0.6931472, %v502_v8 }
  0x7c   : > { %v248_v10 = vsel %vm243_vm0, %v247_v9, 0.0 }
  0x7d   : > { %v262_v11 = vmul.f32 %v248_v10, %v248_v10  ;;  %397 = vst [vmem:[%s225_s19 + $0x8] sm:$0xff] %v248_v10 }
  0x7f   : > { %399 = vst [vmem:[%s225_s19 + $0x10] sm:$0xff] %v262_v11 }
  0x80   : > { %576 = shalt.err (!%p573_p9)
}
  0x81   : > { %s577_s7 = scalar_lea.hbm %s890_s28, 384  ;;  %s581_s24 = scalar_lea.hbm %s952_s2, 768 }
  0x82   : > { %p578_p1 = scmp.ne.s32.totalorder %s890_s28, %s577_s7  ;;  %p582_p12 = scmp.lt.u32.totalorder %s890_s28, %s952_s2 }
  0x83   : > { %p583_p4 = scmp.lt.u32.totalorder %s581_s24, %s577_s7  ;;  %p585_p8 = scmp.lt.u32.totalorder %s577_s7, %s890_s28 }
  0x84   : > { %p579_p3 = pnand %p578_p1, %p967_p5 }
  0x85   : > { %p584_p11 = por %p583_p4, %p582_p12 }
  0x86   : > { %p580_p10 = pneg %p579_p3 }
  0x87   : > { %p586_p13 = por %p585_p8, %p584_p11 }
  0x89   : > { %p587_p6 = pnand %p586_p13, %p580_p10 }
  0x8b   : > { %590 = shalt.err (!%p587_p6)
}
  0x8c   : > { %s679_s25 = smov 128   ;;  %s680_s18 = smov 8  }
  0x8d   : > { %409 = dma.vmem_to_hbm [thread:$0]  (%p967_p5), %s892_s12, 384, %s890_s28, %s894_s22, %s679_s25, %s679_s25, %s680_s18  }
  0x8e PF: > { %s295_s23 = sand.u32 1, %s641_s9   ;;  %p968_p0 = scmp.ne.s32.totalorder %s959_s4, 0 }
  0x8f   : > { %p969_p2 = scmp.ge.s32.totalorder %s673_s17, 2  ;;  %s296_s21 = scalar_lea.sflag [#allocation4], %s295_s23 }
  0x91   : > { %p419_p7 = pnand %p969_p2, %p968_p0 }
  0x93   : > { %636 = dma.done.wait (!%p419_p7), %s296_s21, 384  }
  0x94   : > { %638 = vsyncadd (!%p419_p7), %s296_s21, 4294966912  ;;  %s21_s17 = sadd.s32 1, %s673_s17   ;;  %s970_s9 = smov %s645_s10 }
  0x95   : > { %p18_p9 = scmp.ge.s32.totalorder %s21_s17, 4   ;;  %s971_s10 = smov %s649_s11 }
  0x96   : > { %s972_s11 = smov %s768_s29  ;;  %s973_s12 = smov %s657_s13 }
  0x97   : > { %s974_s13 = smov %s661_s14  ;;  %s975_s14 = smov %s771_s30 }
  0x98   : > { %s976_s15 = smov %s669_s16  ;;  %s977_s16 = smov %s979_s20 }
  0x99   :  { %20 = sbr.rel (!%p18_p9) target bundleno = 10 (0xa), region = 92 }
  0xa0   :  { %301 = vsyncpa [#allocation3], 1 }
  0xa1   :  { %303 = vsyncpa [#allocation3 + $0x1], 1 }
  0xa2   :  { %304 = vsyncpa [#allocation6], 1 }
  0xa3   :  { %306 = vsyncpa [#allocation6 + $0x1], 1 }
  0xa4   :  { %307 = vsyncpa [#allocation4], 1 }
  0xa5   :  { %309 = vsyncpa [#allocation4 + $0x1], 1 }

</bundles_post_ra>
